<compile_context>
chip_gen: v7x
topology: tpu7x:2x2x1
jax: 0.10.0
libtpu: 0.0.40
codegen_flags: <defaults>
</compile_context>

<pallas_src>
import jax
import jax.numpy as jnp
from jax import lax
from jax.experimental import pallas as pl
from jax.experimental.pallas import tpu as pltpu


def conv_gemm_kernel(w_ref, p_ref, b_ref, o_ref):
    # w_ref: [Cout, K]         bf16, grid-invariant (resident)
    # p_ref: [1, K, OH*OW]     bf16, full-im2col patches for this batch element
    #                          (border columns are all zero -> result = bias there)
    # b_ref: [Cout, 1]         f32,  grid-invariant (resident)
    # o_ref: [1, Cout, OH*OW]  f32,  final layout; wrapper only bitcast-reshapes
    acc = jnp.dot(w_ref[...], p_ref[0], preferred_element_type=jnp.float32)
    o_ref[0] = acc + b_ref[...]


def conv2d_pallas(x_nchw, weight, bias, *, stride=2, padding=4):
    """nn.Conv2d(3->64, k=2, s=2, p=4, bias=True) as one fused Pallas GEMM."""
    N, C, H, W = x_nchw.shape
    Cout, Cin, KH, KW = weight.shape
    assert C == Cin
    # Non-overlapping windows: the padded image is tiled exactly by KHxKW blocks.
    assert KH == stride and KW == stride
    Hp, Wp = H + 2 * padding, W + 2 * padding
    OH = (Hp - KH) // stride + 1
    OW = (Wp - KW) // stride + 1
    assert Hp == OH * KH and Wp == OW * KW

    K = C * KH * KW            # 12
    M = OH * OW                # all output positions, border included

    # ---- prologue: one fused pad + im2col transpose, in bf16 ----
    xp = jnp.pad(x_nchw.astype(jnp.bfloat16),
                 ((0, 0), (0, 0), (padding, padding), (padding, padding)))
    # full im2col of non-overlapping KHxKW blocks; (c, kh, kw) ordering matches
    # weight.reshape(Cout, K), so the weight needs no transpose at all.
    pmat = (xp.reshape(N, C, OH, KH, OW, KW)
              .transpose((0, 1, 3, 5, 2, 4))
              .reshape(N, K, M))
    wmat = weight.reshape(Cout, K).astype(jnp.bfloat16)    # contiguous -> bitcast
    bcol = bias.reshape(Cout, 1).astype(jnp.float32)

    # TODO(synk): for large spatial sizes (OH*OW >> 1k) add a lane-dense M-tile grid
    # axis (multiples of 128) and re-derive the tiles against v7x's 32 MiB scoped /
    # 64 MiB physical VMEM; the shipped layer fits comfortably in a single block.
    out = pl.pallas_call(
        conv_gemm_kernel,
        out_shape=jax.ShapeDtypeStruct((N, Cout, M), jnp.float32),
        grid=(N,),   # >= 2 tiles for the shipped batch -> both v7x TensorCores busy
        in_specs=[
            pl.BlockSpec((Cout, K), lambda n: (0, 0)),      # weights resident
            pl.BlockSpec((1, K, M), lambda n: (n, 0, 0)),   # patches of batch n
            pl.BlockSpec((Cout, 1), lambda n: (0, 0)),      # bias resident
        ],
        out_specs=pl.BlockSpec((1, Cout, M), lambda n: (n, 0, 0)),
        compiler_params=pltpu.CompilerParams(
            dimension_semantics=("parallel",),
            vmem_limit_bytes=16 << 20,   # actual footprint ~0.1 MiB; safe on v5e/v6e/v7x
        ),
        cost_estimate=pl.CostEstimate(
            flops=2 * N * M * K * Cout,
            transcendentals=0,
            bytes_accessed=2 * (N * K * M + Cout * K) + 4 * (Cout + N * Cout * M),
        ),
    )(wmat, pmat, bcol)

    # contiguous split of the trailing dim -> pure metadata/bitcast, no extra HBM pass
    return out.reshape(N, Cout, OH, OW)


def alexnet_forward(x, params):
    # forward(x): x = self.features(x); return x   (early return; rest is dead code)
    return conv2d_pallas(x, params["w"], params["b"], stride=2, padding=4)


def init_params(key):
    # Conv2d(3, 64, kernel_size=2) -- deterministic PyTorch-style uniform init.
    kw_key, kb_key = jax.random.split(key)
    fan_in = 3 * 2 * 2
    bound = 1.0 / (fan_in ** 0.5)
    w = jax.random.uniform(kw_key, (64, 3, 2, 2), jnp.float32, -bound, bound)
    b = jax.random.uniform(kb_key, (64,), jnp.float32, -bound, bound)
    return {"w": w, "b": b}


if __name__ == "__main__":
    key = jax.random.PRNGKey(0)
    k_x, k_p = jax.random.split(key)

    # small input consistent with Conv2d(3, 64, k=2, s=2, p=4)
    x = jax.random.normal(k_x, (2, 3, 16, 16), jnp.float32)
    params = init_params(k_p)

    fwd = jax.jit(alexnet_forward)
    y = jax.block_until_ready(fwd(x, params))
    assert y.shape == (2, 64, 12, 12), y.shape

    # f32 reference; kernel uses bf16 operands with f32 accumulation -> loose tol.
    ref = lax.conv_general_dilated(
        x, params["w"], window_strides=(2, 2),
        padding=((4, 4), (4, 4)),
        dimension_numbers=("NCHW", "OIHW", "NCHW"),
        precision=lax.Precision.HIGHEST,
    ) + params["b"].reshape(1, -1, 1, 1)

    err = float(jnp.max(jnp.abs(y - ref)))
    assert err < 5e-2, f"max abs err {err}"
    print("KERNEL_OK")
</pallas_src>

<mosaic_0001>
module attributes {stable_mosaic.version = 11 : i64} {
  func.func @conv_gemm_kernel(%arg0: i32, %arg1: memref<64x12xbf16, #tpu.memory_space<vmem>>, %arg2: memref<1x12x144xbf16, #tpu.memory_space<vmem>>, %arg3: memref<64x1xf32, #tpu.memory_space<vmem>>, %arg4: memref<1x64x144xf32, #tpu.memory_space<vmem>>) attributes {dimension_semantics = [#tpu.dimension_semantics<parallel>], iteration_bounds = array<i64: 2>, scalar_prefetch = 0 : i64, scratch_operands = 0 : i64, tpu.core_type = #tpu.core_type<tc>, window_params = [{pipeline_mode = #tpu.pipeline_mode<synchronous>, transform_indices = @transform_0, window_bounds = array<i64: 64, 12>}, {transform_indices = @transform_1, window_bounds = array<i64: 1, 12, 144>}, {pipeline_mode = #tpu.pipeline_mode<synchronous>, transform_indices = @transform_2, window_bounds = array<i64: 64, 1>}, {transform_indices = @transform_3, window_bounds = array<i64: 1, 64, 144>}]} {
    %c0 = arith.constant 0 : index
    %c0_0 = arith.constant 0 : index
    %0 = vector.load %arg1[%c0, %c0_0] : memref<64x12xbf16, #tpu.memory_space<vmem>>, vector<64x12xbf16>
    %c0_1 = arith.constant 0 : index
    %c0_2 = arith.constant 0 : index
    %c0_3 = arith.constant 0 : index
    %1 = vector.load %arg2[%c0_1, %c0_2, %c0_3] : memref<1x12x144xbf16, #tpu.memory_space<vmem>>, vector<1x12x144xbf16>
    %2 = vector.shape_cast %1 : vector<1x12x144xbf16> to vector<12x144xbf16>
    %cst = arith.constant dense<0.000000e+00> : vector<64x144xf32>
    %3 = tpu.matmul %0, %2, %cst {dimension_numbers = #tpu.dot_dimension_numbers<[1], [0], [0], [1], [0, 0, 1, 1], [], []>} : vector<64x12xbf16>, vector<12x144xbf16>, vector<64x144xf32> -> vector<64x144xf32>
    %c0_4 = arith.constant 0 : index
    %c0_5 = arith.constant 0 : index
    %4 = vector.load %arg3[%c0_4, %c0_5] : memref<64x1xf32, #tpu.memory_space<vmem>>, vector<64x1xf32>
    %5 = vector.broadcast %4 : vector<64x1xf32> to vector<64x144xf32>
    %6 = arith.addf %3, %5 : vector<64x144xf32>
    %c0_6 = arith.constant 0 : index
    %c0_7 = arith.constant 0 : index
    %c0_8 = arith.constant 0 : index
    %7 = vector.load %arg4[%c0_6, %c0_7, %c0_8] : memref<1x64x144xf32, #tpu.memory_space<vmem>>, vector<1x64x144xf32>
    %8 = vector.shape_cast %7 : vector<1x64x144xf32> to vector<64x144xf32>
    %9 = vector.shape_cast %6 : vector<64x144xf32> to vector<1x64x144xf32>
    tpu.vector_store %arg4[%c0_6, %c0_7, %c0_8], %9 {strides = array<i32>} : memref<1x64x144xf32, #tpu.memory_space<vmem>>, vector<1x64x144xf32>,
    return
  }
  func.func @transform_0(%arg0: i32) -> (i32, i32) {
    %c0_i32 = arith.constant 0 : i32
    %c0_i32_0 = arith.constant 0 : i32
    %c0_i32_1 = arith.constant 0 : i32
    return %c0_i32, %c0_i32_0 : i32, i32
  }
  func.func @transform_1(%arg0: i32) -> (i32, i32, i32) {
    %c0_i32 = arith.constant 0 : i32
    %c0_i32_0 = arith.constant 0 : i32
    %c0_i32_1 = arith.constant 0 : i32
    return %arg0, %c0_i32, %c0_i32_0 : i32, i32, i32
  }
  func.func @transform_2(%arg0: i32) -> (i32, i32) {
    %c0_i32 = arith.constant 0 : i32
    %c0_i32_0 = arith.constant 0 : i32
    %c0_i32_1 = arith.constant 0 : i32
    return %c0_i32, %c0_i32_0 : i32, i32
  }
  func.func @transform_3(%arg0: i32) -> (i32, i32, i32) {
    %c0_i32 = arith.constant 0 : i32
    %c0_i32_0 = arith.constant 0 : i32
    %c0_i32_1 = arith.constant 0 : i32
    return %arg0, %c0_i32, %c0_i32_0 : i32, i32, i32
  }
}

</mosaic_0001>

<bundles_post_ra>
// kernel: alexnet_forward.1
= control target key start
LH: loop header
LB: loop body
LE: loop exit
PB: predicated region body
PF: predicated region fallthrough
CT: control target
= control target key end

     0   :  { %s496_s12 = smov 0   ;;  %s583_s0 = inlined_call_operand.vmem [shape: bf16[64,12], index: 0, kind: input, shape index: {}]   ;;  %s584_s1 = inlined_call_operand.vmem [shape: bf16[2,12,144], index: 1, kind: input, shape index: {}]   ;;  %s585_s2 = inlined_call_operand.vmem [shape: f32[64,1], index: 2, kind: input, shape index: {}]   ;;  %s586_s3 = inlined_call_operand.vmem [shape: f32[2,64,144], index: 3, kind: output, shape index: {}]  }
   0x1 LB: > { %s423_s13 = sadd.s32 4294967295, %s473_s12   ;;  %p427_p0 = scmp.ge.s32.totalorder %s473_s12, 1  ;;  %s473_s12 = sphi %s496_s12, %s13_s12  }
   0x2   : > { %p137_p1 = scmp.lt.s32.totalorder %s473_s12, 3 }
   0x4   : > { %p138_p2 = pnand %p427_p0, %p137_p1 }
   0x5   : > { %p161_p3 = scmp.lt.s32.totalorder (!%p138_p2), %s423_s13, 1  ;;  %v475_v0 = vmov (!%p138_p2), 0   ;;  %v184_v1 = vld [vmem:[%s585_s2 + $0x10] sm:$0xff] (!%p138_p2)  ;;  %v182_v2 = vld [vmem:[%s585_s2] sm:$0xff] (!%p138_p2)  ;;  %vm271_vm0 = vcmask (!%p138_p2), 1045504   ;;  %v185_v3 = vld [vmem:[%s585_s2 + $0x18] sm:$0xff] (!%p138_p2) }
   0x6   : > { %141 = sbr.rel (%p138_p2) target bundleno = 247 (0xf7), region = 32  ;;  %310 = vmatprep.mubr.bf16.mxu0 (!%p138_p2), %v475_v0  ;;  %330 = vmatprep.mubr.bf16.mxu1 (!%p138_p2), %v475_v0  ;;  %v183_v4 = vld [vmem:[%s585_s2 + $0x8] sm:$0xff] (!%p138_p2)  ;;  %v463_v8 = vld [vmem:[%s583_s0] sm:$0xff] (!%p138_p2)   ;;  %v464_v9 = vld [vmem:[%s583_s0 + $0x10] sm:$0xff] (!%p138_p2)   ;;  %vm258_vm1 = vcmask (!%p138_p2), 97280   ;;  %vm352_vm2 = vcmask (!%p138_p2), 130048  }
   0x7   : > { %459 = vset.pattern.permute.xlu1 (!%p138_p2), %v475_v0  ;;  %458 = vset.pattern.permute.xlu0 (!%p138_p2), %v475_v0  ;;  %v187_v10 = vld [vmem:[%s585_s2 + $0x28] sm:$0xff] (!%p138_p2)  ;;  %v186_v11 = vld [vmem:[%s585_s2 + $0x20] sm:$0xff] (!%p138_p2)  ;;  %v189_v12 = vld [vmem:[%s585_s2 + $0x38] sm:$0xff] (!%p138_p2) }
   0x8   : > { %202 = vperm.xlu1 (!%p138_p2), %459, %v184_v1   ;;  %192 = vperm.xlu0 (!%p138_p2), %458, %v182_v2   ;;  %v188_v13 = vld [vmem:[%s585_s2 + $0x30] sm:$0xff] (!%p138_p2)  ;;  %v465_v14 = vld [vmem:[%s583_s0 + $0x8] sm:$0xff] (!%p138_p2)   ;;  %v466_v15 = vld [vmem:[%s583_s0 + $0x18] sm:$0xff] (!%p138_p2)  }
   0xc   : > { %207 = vperm.xlu1 (!%p138_p2), %459, %v185_v3   ;;  %197 = vperm.xlu0 (!%p138_p2), %458, %v183_v4  }
   0xd   : > { %s588_s13 = smov (!%p161_p3, %s423_s13), 1 }
   0xe   : > { %s445_s14 = sshll.u32 %s588_s13, 4  ;;  %s446_s17 = sshll.u32 %s588_s13, 7 }
   0xf   : > { %s165_s21 = scalar_lea.vmem %s584_s1, %s445_s14  ;;  %s554_s20 = scalar_lea.vmem %s586_s3, %s446_s17 }
  0x10   : > { %v460_v5 = vld [vmem:[%s165_s21 + $0x4] ss:$8 sps:$4 sm:$0x3f]   ;;  %v462_v6 = vld [vmem:[%s165_s21] ss:$8 sps:$4 sm:$0x3f]   ;;  %217 = vperm.xlu1 %459, %v187_v10   ;;  %212 = vperm.xlu0 %458, %v186_v11  }
  0x11   : > { %438 = vmatprep.subr.msk.bf16.mxu0 %vm271_vm0, %v460_v5  ;;  %447 = vmatprep.subr.msk.bf16.mxu1 %vm271_vm0, %v460_v5  ;;  %v273_v7 = vsel %vm271_vm0, %v462_v6, 0 }
  0x12   : > { %279 = vmatpush1.bf16.msra.mxu0 %v273_v7  ;;  %448 = vmatpush1.bf16.msra.mxu1 %v273_v7 }
  0x14   : > { %227 = vperm.xlu1 %459, %v189_v12   ;;  %222 = vperm.xlu0 %458, %v188_v13  }
  0x15   : > { %439 = vmatmul.mubr.msk.bf16.vlgmr.msra.gmra.mrb[0].mxu0 %vm258_vm1, %v463_v8  ;;  %441 = vmatmul.mubr.msk.bf16.vlgmr.msra.gmra.mrb[0].mxu1 %vm258_vm1, %v464_v9 }
  0x16   : > { %320 = vmatprep.mubr.bf16.mxu0 %v475_v0  ;;  %340 = vmatprep.mubr.bf16.mxu1 %v475_v0 }
  0x1d   : > { %440 = vmatmul.mubr.msk.bf16.gmra.mrb[4].mxu0 %vm258_vm1, %v465_v14  ;;  %442 = vmatmul.mubr.msk.bf16.gmra.mrb[4].mxu1 %vm258_vm1, %v466_v15 }
  0x87   : > { %v203_v16 = vpop.permute.xlu1 %202  ;;  %v193_v17 = vpop.permute.xlu0 %192 }
  0x8b   : > { %v208_v18 = vpop.permute.xlu1 %207  ;;  %v198_v19 = vpop.permute.xlu0 %197 }
  0x8f   : > { %v218_v20 = vpop.permute.xlu1 %217  ;;  %v213_v21 = vpop.permute.xlu0 %212 }
  0x93   : > { %v228_v38 = vpop.permute.xlu1 %227  ;;  %v223_v39 = vpop.permute.xlu0 %222 }
  0xe8   : > { %v312_v22 = vpop.f32.mrb[0].mxu0  ;;  %v332_v23 = vpop.f32.mrb[0].mxu1 }
  0xe9   : > { %v313_v24 = vadd.f32 %v312_v22, %v193_v17  ;;  %v333_v25 = vadd.f32 %v332_v23, %v213_v21  ;;  %v314_v26 = vpop.f32.mrb[1].mxu0  ;;  %v334_v27 = vpop.f32.mrb[1].mxu1 }
  0xea   : > { %v315_v28 = vadd.f32 %v314_v26, %v193_v17  ;;  %v335_v29 = vadd.f32 %v334_v27, %v213_v21  ;;  %v316_v30 = vpop.f32.mrb[2].mxu0  ;;  %v336_v31 = vpop.f32.mrb[2].mxu1 }
  0xeb   : > { %351 = vst [vmem:[%s554_s20] sm:$0xff] %v313_v24  ;;  %360 = vst [vmem:[%s554_s20 + $0x40] sm:$0xff] %v333_v25  ;;  %v317_v32 = vadd.f32 %v316_v30, %v198_v19  ;;  %v337_v33 = vadd.f32 %v336_v31, %v218_v20  ;;  %v318_v34 = vpop.f32.mrb[3].mxu0  ;;  %v338_v35 = vpop.f32.mrb[3].mxu1 }
  0xec   : > { %353 = vst.msk [vmem:[%s554_s20 + $0x8] sm:$0xff] %vm352_vm2, %v315_v28  ;;  %361 = vst.msk [vmem:[%s554_s20 + $0x48] sm:$0xff] %vm352_vm2, %v335_v29  ;;  %v319_v36 = vadd.f32 %v318_v34, %v198_v19  ;;  %v339_v37 = vadd.f32 %v338_v35, %v218_v20 }
  0xed   : > { %354 = vst [vmem:[%s554_s20 + $0x10] sm:$0xff] %v317_v32  ;;  %362 = vst [vmem:[%s554_s20 + $0x50] sm:$0xff] %v337_v33 }
  0xee   : > { %355 = vst.msk [vmem:[%s554_s20 + $0x18] sm:$0xff] %vm352_vm2, %v319_v36  ;;  %363 = vst.msk [vmem:[%s554_s20 + $0x58] sm:$0xff] %vm352_vm2, %v339_v37 }
  0xf0   : > { %v322_v40 = vpop.f32.mrb[4].mxu0  ;;  %v342_v41 = vpop.f32.mrb[4].mxu1 }
  0xf1   : > { %v323_v42 = vadd.f32 %v322_v40, %v203_v16  ;;  %v343_v43 = vadd.f32 %v342_v41, %v223_v39  ;;  %v324_v44 = vpop.f32.mrb[5].mxu0  ;;  %v344_v45 = vpop.f32.mrb[5].mxu1 }
  0xf2   : > { %v325_v46 = vadd.f32 %v324_v44, %v203_v16  ;;  %v345_v47 = vadd.f32 %v344_v45, %v223_v39  ;;  %v326_v48 = vpop.f32.mrb[6].mxu0  ;;  %v346_v49 = vpop.f32.mrb[6].mxu1 }
  0xf3   : > { %356 = vst [vmem:[%s554_s20 + $0x20] sm:$0xff] %v323_v42  ;;  %364 = vst [vmem:[%s554_s20 + $0x60] sm:$0xff] %v343_v43  ;;  %v327_v50 = vadd.f32 %v326_v48, %v208_v18  ;;  %v347_v51 = vadd.f32 %v346_v49, %v228_v38  ;;  %v328_v52 = vpop.f32.mrb[7].mxu0  ;;  %v348_v53 = vpop.f32.mrb[7].mxu1 }
  0xf4   : > { %357 = vst.msk [vmem:[%s554_s20 + $0x28] sm:$0xff] %vm352_vm2, %v325_v46  ;;  %365 = vst.msk [vmem:[%s554_s20 + $0x68] sm:$0xff] %vm352_vm2, %v345_v47  ;;  %v329_v54 = vadd.f32 %v328_v52, %v208_v18  ;;  %v349_v55 = vadd.f32 %v348_v53, %v228_v38 }
  0xf5   : > { %358 = vst [vmem:[%s554_s20 + $0x30] sm:$0xff] %v327_v50  ;;  %366 = vst [vmem:[%s554_s20 + $0x70] sm:$0xff] %v347_v51 }
  0xf6   : > { %359 = vst.msk [vmem:[%s554_s20 + $0x38] sm:$0xff] %vm352_vm2, %v329_v54  ;;  %367 = vst.msk [vmem:[%s554_s20 + $0x78] sm:$0xff] %vm352_vm2, %v349_v55 }
  0xf7 PF: > { %s13_s12 = sadd.s32 1, %s473_s12  }
  0xf8   : > { %p10_p4 = scmp.ge.s32.totalorder %s13_s12, 4  }
  0xfa   :  { %12 = sbr.rel (!%p10_p4) target bundleno = 1 (0x1), region = 62 }

</bundles_post_ra>
